<compile_context>
chip_gen: v7x
topology: tpu7x:2x2x1
jax: 0.10.0
libtpu: 0.0.40
codegen_flags: <defaults>
</compile_context>

<pallas_src>
import functools
import math

import jax
import jax.numpy as jnp
from jax.experimental import pallas as pl
from jax.experimental.pallas import tpu as pltpu


# ----------------------------------------------------------------------------
# Kernel 1: fused Q/K/V projections (single concatenated matmul + selective ReLU)
# ----------------------------------------------------------------------------

def _qkv_kernel(x_ref, w_ref, b_ref, q_ref, k_ref, v_ref, *, pred_len, seq_len):
    # Column layout of the concatenated weight: [ q (pred_len) | v (seq_len) | k (seq_len) ]
    # so that the ReLU'd region ([0 : pred_len+seq_len]) is contiguous.
    y = jnp.dot(x_ref[...], w_ref[...], preferred_element_type=jnp.float32)
    y = y + b_ref[...]
    q_ref[...] = jnp.maximum(y[:, :pred_len], 0.0).astype(q_ref.dtype)
    v_ref[...] = jnp.maximum(y[:, pred_len:pred_len + seq_len], 0.0).astype(v_ref.dtype)
    k_ref[...] = y[:, pred_len + seq_len:].astype(k_ref.dtype)


def qkv_projection(x, wq, bq, wk, bk, wv, bv):
    B, seq_len = x.shape
    pred_len = wq.shape[1]
    n_cat = pred_len + 2 * seq_len
    w_cat = jnp.concatenate([wq, wv, wk], axis=1)              # (seq_len, pred+2*seq)
    b_cat = jnp.concatenate([bq, bv, bk]).reshape(1, n_cat)
    q, k, v = pl.pallas_call(
        functools.partial(_qkv_kernel, pred_len=pred_len, seq_len=seq_len),
        out_shape=(jax.ShapeDtypeStruct((B, pred_len), jnp.float32),
                   jax.ShapeDtypeStruct((B, seq_len), jnp.float32),
                   jax.ShapeDtypeStruct((B, seq_len), jnp.float32)),
        grid=(1,),
        in_specs=[
            pl.BlockSpec((B, seq_len), lambda i: (0, 0)),
            pl.BlockSpec((seq_len, n_cat), lambda i: (0, 0)),
            pl.BlockSpec((1, n_cat), lambda i: (0, 0)),
        ],
        out_specs=(pl.BlockSpec((B, pred_len), lambda i: (0, 0)),
                   pl.BlockSpec((B, seq_len), lambda i: (0, 0)),
                   pl.BlockSpec((B, seq_len), lambda i: (0, 0))),
        compiler_params=pltpu.CompilerParams(dimension_semantics=("arbitrary",)),
    )(x, w_cat, b_cat)
    return q, k, v


# ----------------------------------------------------------------------------
# Kernel 2: fused attention + output projection + residual
# ----------------------------------------------------------------------------

def _attn_out_kernel(qh_ref, kh_ref, vh_ref, qres_ref, wo_ref, bo_ref, o_ref,
                     *, n_heads, n_l):
    scale = 1.0 / math.sqrt(n_heads)
    # scores: (B, L, S) — all heads / whole batch in one batched MXU einsum.
    s = jnp.einsum('ble,bse->bls', qh_ref[...], kh_ref[...],
                   preferred_element_type=jnp.float32) * scale
    m = jnp.max(s, axis=-1, keepdims=True)
    p = jnp.exp(s - m)
    denom = jnp.sum(p, axis=-1, keepdims=True)
    a = p * pl.reciprocal(denom, approx=True)          # EUP reciprocal (free slot)
    # context: (B, L, H)
    vctx = jnp.einsum('bls,bse->ble', a, vh_ref[...],
                      preferred_element_type=jnp.float32)
    # Output projection + residual, accumulated per head-row block of Wo so no
    # in-kernel reshape of (B, L, H) -> (B, pred_len) is needed.
    wo = wo_ref[...]                                    # (pred_len, pred_len)
    acc = qres_ref[...] + bo_ref[...]                   # residual query + bias
    for l in range(n_l):                                # static, small
        acc = acc + jnp.dot(vctx[:, l, :], wo[l * n_heads:(l + 1) * n_heads, :],
                            preferred_element_type=jnp.float32)
    o_ref[...] = acc.astype(o_ref.dtype)


def attention_out(qh, kh, vh, q_res, wo, bo, n_heads):
    B, L, H = qh.shape
    S = kh.shape[1]
    pred_len = q_res.shape[1]
    bo2 = bo.reshape(1, pred_len)
    return pl.pallas_call(
        functools.partial(_attn_out_kernel, n_heads=n_heads, n_l=L),
        out_shape=jax.ShapeDtypeStruct((B, pred_len), jnp.float32),
        grid=(1,),
        in_specs=[
            pl.BlockSpec((B, L, H), lambda i: (0, 0, 0)),
            pl.BlockSpec((B, S, H), lambda i: (0, 0, 0)),
            pl.BlockSpec((B, S, H), lambda i: (0, 0, 0)),
            pl.BlockSpec((B, pred_len), lambda i: (0, 0)),
            pl.BlockSpec((pred_len, pred_len), lambda i: (0, 0)),
            pl.BlockSpec((1, pred_len), lambda i: (0, 0)),
        ],
        out_specs=pl.BlockSpec((B, pred_len), lambda i: (0, 0)),
        compiler_params=pltpu.CompilerParams(dimension_semantics=("arbitrary",)),
    )(qh, kh, vh, q_res, wo, bo2)


# ----------------------------------------------------------------------------
# Forward (two pallas_calls; reshapes between them are free row-major .view's)
# ----------------------------------------------------------------------------

def pwattn_forward(x, params, n_heads):
    # nn.Dropout(attention_dropout) is identity (p=0.0 default / eval mode).
    B, seq_len = x.shape
    pred_len = params["wq"].shape[1]
    H = n_heads
    L = pred_len // H
    S = seq_len // H

    q, k, v = qkv_projection(x, params["wq"], params["bq"],
                             params["wk"], params["bk"],
                             params["wv"], params["bv"])

    qh = q.reshape(B, L, H)        # torch .view equivalents — no data movement
    kh = k.reshape(B, S, H)
    vh = v.reshape(B, S, H)

    return attention_out(qh, kh, vh, q, params["wo"], params["bo"], H)


def pwattn_reference(x, params, n_heads):
    """Pure-JAX reference of the PyTorch forward (for a sanity check)."""
    H = n_heads
    B, seq_len = x.shape
    pred_len = params["wq"].shape[1]
    q = jax.nn.relu(x @ params["wq"] + params["bq"])
    k = x @ params["wk"] + params["bk"]
    v = jax.nn.relu(x @ params["wv"] + params["bv"])
    queries = q.reshape(B, pred_len // H, H)
    keys = k.reshape(B, seq_len // H, H)
    values = v.reshape(B, seq_len // H, H)
    scores = jnp.einsum('ble,bse->bls', queries, keys)
    A = jax.nn.softmax(scores / math.sqrt(H), axis=-1)
    V = jnp.einsum('bls,bse->ble', A, values).reshape(B, pred_len)
    return q + V @ params["wo"] + params["bo"]


# ----------------------------------------------------------------------------
# Deterministic parameter init (matches nn.Linear default init; weights stored (in, out))
# ----------------------------------------------------------------------------

def init_linear(key, d_in, d_out):
    k1, k2 = jax.random.split(key)
    bound = 1.0 / math.sqrt(d_in)
    w = jax.random.uniform(k1, (d_in, d_out), jnp.float32, -bound, bound)
    b = jax.random.uniform(k2, (d_out,), jnp.float32, -bound, bound)
    return w, b


def init_pwattn(key, seq_len, pred_len):
    ks = jax.random.split(key, 4)
    wq, bq = init_linear(ks[0], seq_len, pred_len)
    wk, bk = init_linear(ks[1], seq_len, seq_len)
    wv, bv = init_linear(ks[2], seq_len, seq_len)
    wo, bo = init_linear(ks[3], pred_len, pred_len)
    return dict(wq=wq, bq=bq, wk=wk, bk=bk, wv=wv, bv=bv, wo=wo, bo=bo)


# ----------------------------------------------------------------------------
# Main
# ----------------------------------------------------------------------------

if __name__ == "__main__":
    B, seq_len, pred_len, n_heads = 4, 32, 16, 8     # L = 2, S = 4

    key = jax.random.PRNGKey(0)
    kx, kp = jax.random.split(key)
    x = jax.random.normal(kx, (B, seq_len), jnp.float32)
    params = init_pwattn(kp, seq_len, pred_len)

    fwd = jax.jit(functools.partial(pwattn_forward, n_heads=n_heads))
    out = fwd(x, params)
    jax.block_until_ready(out)

    assert out.shape == (B, pred_len)
    ref = pwattn_reference(x, params, n_heads)
    max_err = float(jnp.max(jnp.abs(out - ref)))
    assert max_err < 5e-2, f"mismatch vs reference: {max_err}"

    print("KERNEL_OK")
</pallas_src>

<mosaic_0001>
module attributes {stable_mosaic.version = 11 : i64} {
  func.func @_qkv_kernel(%arg0: i32, %arg1: memref<4x32xf32, #tpu.memory_space<vmem>>, %arg2: memref<32x80xf32, #tpu.memory_space<vmem>>, %arg3: memref<1x80xf32, #tpu.memory_space<vmem>>, %arg4: memref<4x16xf32, #tpu.memory_space<vmem>>, %arg5: memref<4x32xf32, #tpu.memory_space<vmem>>, %arg6: memref<4x32xf32, #tpu.memory_space<vmem>>) attributes {dimension_semantics = [#tpu.dimension_semantics<arbitrary>], iteration_bounds = array<i64: 1>, scalar_prefetch = 0 : i64, scratch_operands = 0 : i64, tpu.core_type = #tpu.core_type<tc>, window_params = [{pipeline_mode = #tpu.pipeline_mode<synchronous>, transform_indices = @transform_0, window_bounds = array<i64: 4, 32>}, {pipeline_mode = #tpu.pipeline_mode<synchronous>, transform_indices = @transform_1, window_bounds = array<i64: 32, 80>}, {pipeline_mode = #tpu.pipeline_mode<synchronous>, transform_indices = @transform_2, window_bounds = array<i64: 1, 80>}, {pipeline_mode = #tpu.pipeline_mode<synchronous>, transform_indices = @transform_3, window_bounds = array<i64: 4, 16>}, {pipeline_mode = #tpu.pipeline_mode<synchronous>, transform_indices = @transform_4, window_bounds = array<i64: 4, 32>}, {pipeline_mode = #tpu.pipeline_mode<synchronous>, transform_indices = @transform_5, window_bounds = array<i64: 4, 32>}]} {
    %c0 = arith.constant 0 : index
    %c0_0 = arith.constant 0 : index
    %0 = vector.load %arg1[%c0, %c0_0] : memref<4x32xf32, #tpu.memory_space<vmem>>, vector<4x32xf32>
    %c0_1 = arith.constant 0 : index
    %c0_2 = arith.constant 0 : index
    %1 = vector.load %arg2[%c0_1, %c0_2] : memref<32x80xf32, #tpu.memory_space<vmem>>, vector<32x80xf32>
    %cst = arith.constant dense<0.000000e+00> : vector<4x80xf32>
    %2 = tpu.matmul %0, %1, %cst {dimension_numbers = #tpu.dot_dimension_numbers<[1], [0], [0], [1], [0, 0, 1, 1], [], []>} : vector<4x32xf32>, vector<32x80xf32>, vector<4x80xf32> -> vector<4x80xf32>
    %c0_3 = arith.constant 0 : index
    %c0_4 = arith.constant 0 : index
    %3 = vector.load %arg3[%c0_3, %c0_4] : memref<1x80xf32, #tpu.memory_space<vmem>>, vector<1x80xf32>
    %4 = vector.broadcast %3 : vector<1x80xf32> to vector<4x80xf32>
    %5 = arith.addf %2, %4 : vector<4x80xf32>
    %6 = vector.extract_strided_slice %5 {offsets = [0, 0], sizes = [4, 16], strides = [1, 1]} : vector<4x80xf32> to vector<4x16xf32>
    %cst_5 = arith.constant 0.000000e+00 : f32
    %7 = vector.broadcast %cst_5 : f32 to vector<4x16xf32>
    %8 = arith.maximumf %6, %7 : vector<4x16xf32>
    %c0_6 = arith.constant 0 : index
    %c0_7 = arith.constant 0 : index
    %9 = vector.load %arg4[%c0_6, %c0_7] : memref<4x16xf32, #tpu.memory_space<vmem>>, vector<4x16xf32>
    tpu.vector_store %arg4[%c0_6, %c0_7], %8 {strides = array<i32>} : memref<4x16xf32, #tpu.memory_space<vmem>>, vector<4x16xf32>,
    %10 = vector.extract_strided_slice %5 {offsets = [0, 16], sizes = [4, 32], strides = [1, 1]} : vector<4x80xf32> to vector<4x32xf32>
    %cst_8 = arith.constant 0.000000e+00 : f32
    %11 = vector.broadcast %cst_8 : f32 to vector<4x32xf32>
    %12 = arith.maximumf %10, %11 : vector<4x32xf32>
    %c0_9 = arith.constant 0 : index
    %c0_10 = arith.constant 0 : index
    %13 = vector.load %arg6[%c0_9, %c0_10] : memref<4x32xf32, #tpu.memory_space<vmem>>, vector<4x32xf32>
    tpu.vector_store %arg6[%c0_9, %c0_10], %12 {strides = array<i32>} : memref<4x32xf32, #tpu.memory_space<vmem>>, vector<4x32xf32>,
    %14 = vector.extract_strided_slice %5 {offsets = [0, 48], sizes = [4, 32], strides = [1, 1]} : vector<4x80xf32> to vector<4x32xf32>
    %c0_11 = arith.constant 0 : index
    %c0_12 = arith.constant 0 : index
    %15 = vector.load %arg5[%c0_11, %c0_12] : memref<4x32xf32, #tpu.memory_space<vmem>>, vector<4x32xf32>
    tpu.vector_store %arg5[%c0_11, %c0_12], %14 {strides = array<i32>} : memref<4x32xf32, #tpu.memory_space<vmem>>, vector<4x32xf32>,
    return
  }
  func.func @transform_0(%arg0: i32) -> (i32, i32) {
    %c0_i32 = arith.constant 0 : i32
    %c0_i32_0 = arith.constant 0 : i32
    %c0_i32_1 = arith.constant 0 : i32
    return %c0_i32, %c0_i32_0 : i32, i32
  }
  func.func @transform_1(%arg0: i32) -> (i32, i32) {
    %c0_i32 = arith.constant 0 : i32
    %c0_i32_0 = arith.constant 0 : i32
    %c0_i32_1 = arith.constant 0 : i32
    return %c0_i32, %c0_i32_0 : i32, i32
  }
  func.func @transform_2(%arg0: i32) -> (i32, i32) {
    %c0_i32 = arith.constant 0 : i32
    %c0_i32_0 = arith.constant 0 : i32
    %c0_i32_1 = arith.constant 0 : i32
    return %c0_i32, %c0_i32_0 : i32, i32
  }
  func.func @transform_3(%arg0: i32) -> (i32, i32) {
    %c0_i32 = arith.constant 0 : i32
    %c0_i32_0 = arith.constant 0 : i32
    %c0_i32_1 = arith.constant 0 : i32
    return %c0_i32, %c0_i32_0 : i32, i32
  }
  func.func @transform_4(%arg0: i32) -> (i32, i32) {
    %c0_i32 = arith.constant 0 : i32
    %c0_i32_0 = arith.constant 0 : i32
    %c0_i32_1 = arith.constant 0 : i32
    return %c0_i32, %c0_i32_0 : i32, i32
  }
  func.func @transform_5(%arg0: i32) -> (i32, i32) {
    %c0_i32 = arith.constant 0 : i32
    %c0_i32_0 = arith.constant 0 : i32
    %c0_i32_1 = arith.constant 0 : i32
    return %c0_i32, %c0_i32_0 : i32, i32
  }
}

module attributes {stable_mosaic.version = 11 : i64} {
  func.func @_attn_out_kernel(%arg0: i32, %arg1: memref<4x2x8xf32, #tpu.memory_space<vmem>>, %arg2: memref<4x4x8xf32, #tpu.memory_space<vmem>>, %arg3: memref<4x4x8xf32, #tpu.memory_space<vmem>>, %arg4: memref<4x16xf32, #tpu.memory_space<vmem>>, %arg5: memref<16x16xf32, #tpu.memory_space<vmem>>, %arg6: memref<1x16xf32, #tpu.memory_space<vmem>>, %arg7: memref<4x16xf32, #tpu.memory_space<vmem>>) attributes {dimension_semantics = [#tpu.dimension_semantics<arbitrary>], iteration_bounds = array<i64: 1>, scalar_prefetch = 0 : i64, scratch_operands = 0 : i64, tpu.core_type = #tpu.core_type<tc>, window_params = [{pipeline_mode = #tpu.pipeline_mode<synchronous>, transform_indices = @transform_0, window_bounds = array<i64: 4, 2, 8>}, {pipeline_mode = #tpu.pipeline_mode<synchronous>, transform_indices = @transform_1, window_bounds = array<i64: 4, 4, 8>}, {pipeline_mode = #tpu.pipeline_mode<synchronous>, transform_indices = @transform_2, window_bounds = array<i64: 4, 4, 8>}, {pipeline_mode = #tpu.pipeline_mode<synchronous>, transform_indices = @transform_3, window_bounds = array<i64: 4, 16>}, {pipeline_mode = #tpu.pipeline_mode<synchronous>, transform_indices = @transform_4, window_bounds = array<i64: 16, 16>}, {pipeline_mode = #tpu.pipeline_mode<synchronous>, transform_indices = @transform_5, window_bounds = array<i64: 1, 16>}, {pipeline_mode = #tpu.pipeline_mode<synchronous>, transform_indices = @transform_6, window_bounds = array<i64: 4, 16>}]} {
    %c0 = arith.constant 0 : index
    %c0_0 = arith.constant 0 : index
    %c0_1 = arith.constant 0 : index
    %0 = vector.load %arg1[%c0, %c0_0, %c0_1] : memref<4x2x8xf32, #tpu.memory_space<vmem>>, vector<4x2x8xf32>
    %c0_2 = arith.constant 0 : index
    %c0_3 = arith.constant 0 : index
    %c0_4 = arith.constant 0 : index
    %1 = vector.load %arg2[%c0_2, %c0_3, %c0_4] : memref<4x4x8xf32, #tpu.memory_space<vmem>>, vector<4x4x8xf32>
    "tpu.trace_start"() <{level = 10 : i32, message = "ble,bse->bls"}> : () -> ()
    %cst = arith.constant dense<0.000000e+00> : vector<4x2x4xf32>
    %2 = tpu.matmul %0, %1, %cst {dimension_numbers = #tpu.dot_dimension_numbers<[2], [2], [1], [1], [0, 0, 0, 1, 1, 1], [0], [0]>} : vector<4x2x8xf32>, vector<4x4x8xf32>, vector<4x2x4xf32> -> vector<4x2x4xf32>
    "tpu.trace_stop"() : () -> ()
    %cst_5 = arith.constant 0.353553385 : f32
    %3 = vector.broadcast %cst_5 : f32 to vector<4x2x4xf32>
    %4 = arith.mulf %2, %3 : vector<4x2x4xf32>
    %cst_6 = arith.constant dense<0xFF800000> : vector<4x2xf32>
    %5 = vector.multi_reduction <maximumf>, %4, %cst_6 [2] : vector<4x2x4xf32> to vector<4x2xf32>
    %6 = vector.shape_cast %5 : vector<4x2xf32> to vector<4x2x1xf32>
    %7 = vector.broadcast %6 : vector<4x2x1xf32> to vector<4x2x4xf32>
    %8 = arith.subf %4, %7 : vector<4x2x4xf32>
    %9 = math.exp %8 : vector<4x2x4xf32>
    %cst_7 = arith.constant dense<0.000000e+00> : vector<4x2xf32>
    %10 = vector.multi_reduction <add>, %9, %cst_7 [2] : vector<4x2x4xf32> to vector<4x2xf32>
    %11 = vector.shape_cast %10 : vector<4x2xf32> to vector<4x2x1xf32>
    %12 = tpu.reciprocal %11 {approx = true} : vector<4x2x1xf32> -> vector<4x2x1xf32>
    %13 = vector.broadcast %12 : vector<4x2x1xf32> to vector<4x2x4xf32>
    %14 = arith.mulf %9, %13 : vector<4x2x4xf32>
    %c0_8 = arith.constant 0 : index
    %c0_9 = arith.constant 0 : index
    %c0_10 = arith.constant 0 : index
    %15 = vector.load %arg3[%c0_8, %c0_9, %c0_10] : memref<4x4x8xf32, #tpu.memory_space<vmem>>, vector<4x4x8xf32>
    "tpu.trace_start"() <{level = 10 : i32, message = "bls,bse->ble"}> : () -> ()
    %cst_11 = arith.constant dense<0.000000e+00> : vector<4x2x8xf32>
    %16 = tpu.matmul %14, %15, %cst_11 {dimension_numbers = #tpu.dot_dimension_numbers<[2], [1], [1], [2], [0, 0, 0, 1, 1, 2], [0], [0]>} : vector<4x2x4xf32>, vector<4x4x8xf32>, vector<4x2x8xf32> -> vector<4x2x8xf32>
    "tpu.trace_stop"() : () -> ()
    %c0_12 = arith.constant 0 : index
    %c0_13 = arith.constant 0 : index
    %17 = vector.load %arg5[%c0_12, %c0_13] : memref<16x16xf32, #tpu.memory_space<vmem>>, vector<16x16xf32>
    %c0_14 = arith.constant 0 : index
    %c0_15 = arith.constant 0 : index
    %18 = vector.load %arg4[%c0_14, %c0_15] : memref<4x16xf32, #tpu.memory_space<vmem>>, vector<4x16xf32>
    %c0_16 = arith.constant 0 : index
    %c0_17 = arith.constant 0 : index
    %19 = vector.load %arg6[%c0_16, %c0_17] : memref<1x16xf32, #tpu.memory_space<vmem>>, vector<1x16xf32>
    %20 = vector.broadcast %19 : vector<1x16xf32> to vector<4x16xf32>
    %21 = arith.addf %18, %20 : vector<4x16xf32>
    %22 = vector.extract_strided_slice %16 {offsets = [0, 0, 0], sizes = [4, 1, 8], strides = [1, 1, 1]} : vector<4x2x8xf32> to vector<4x1x8xf32>
    %23 = vector.shape_cast %22 : vector<4x1x8xf32> to vector<4x8xf32>
    %24 = vector.extract_strided_slice %17 {offsets = [0, 0], sizes = [8, 16], strides = [1, 1]} : vector<16x16xf32> to vector<8x16xf32>
    %cst_18 = arith.constant dense<0.000000e+00> : vector<4x16xf32>
    %25 = tpu.matmul %23, %24, %cst_18 {dimension_numbers = #tpu.dot_dimension_numbers<[1], [0], [0], [1], [0, 0, 1, 1], [], []>} : vector<4x8xf32>, vector<8x16xf32>, vector<4x16xf32> -> vector<4x16xf32>
    %26 = arith.addf %21, %25 : vector<4x16xf32>
    %27 = vector.extract_strided_slice %16 {offsets = [0, 1, 0], sizes = [4, 1, 8], strides = [1, 1, 1]} : vector<4x2x8xf32> to vector<4x1x8xf32>
    %28 = vector.shape_cast %27 : vector<4x1x8xf32> to vector<4x8xf32>
    %29 = vector.extract_strided_slice %17 {offsets = [8, 0], sizes = [8, 16], strides = [1, 1]} : vector<16x16xf32> to vector<8x16xf32>
    %cst_19 = arith.constant dense<0.000000e+00> : vector<4x16xf32>
    %30 = tpu.matmul %28, %29, %cst_19 {dimension_numbers = #tpu.dot_dimension_numbers<[1], [0], [0], [1], [0, 0, 1, 1], [], []>} : vector<4x8xf32>, vector<8x16xf32>, vector<4x16xf32> -> vector<4x16xf32>
    %31 = arith.addf %26, %30 : vector<4x16xf32>
    %c0_20 = arith.constant 0 : index
    %c0_21 = arith.constant 0 : index
    %32 = vector.load %arg7[%c0_20, %c0_21] : memref<4x16xf32, #tpu.memory_space<vmem>>, vector<4x16xf32>
    tpu.vector_store %arg7[%c0_20, %c0_21], %31 {strides = array<i32>} : memref<4x16xf32, #tpu.memory_space<vmem>>, vector<4x16xf32>,
    return
  }
  func.func @transform_0(%arg0: i32) -> (i32, i32, i32) {
    %c0_i32 = arith.constant 0 : i32
    %c0_i32_0 = arith.constant 0 : i32
    %c0_i32_1 = arith.constant 0 : i32
    %c0_i32_2 = arith.constant 0 : i32
    return %c0_i32, %c0_i32_0, %c0_i32_1 : i32, i32, i32
  }
  func.func @transform_1(%arg0: i32) -> (i32, i32, i32) {
    %c0_i32 = arith.constant 0 : i32
    %c0_i32_0 = arith.constant 0 : i32
    %c0_i32_1 = arith.constant 0 : i32
    %c0_i32_2 = arith.constant 0 : i32
    return %c0_i32, %c0_i32_0, %c0_i32_1 : i32, i32, i32
  }
  func.func @transform_2(%arg0: i32) -> (i32, i32, i32) {
    %c0_i32 = arith.constant 0 : i32
    %c0_i32_0 = arith.constant 0 : i32
    %c0_i32_1 = arith.constant 0 : i32
    %c0_i32_2 = arith.constant 0 : i32
    return %c0_i32, %c0_i32_0, %c0_i32_1 : i32, i32, i32
  }
  func.func @transform_3(%arg0: i32) -> (i32, i32) {
    %c0_i32 = arith.constant 0 : i32
    %c0_i32_0 = arith.constant 0 : i32
    %c0_i32_1 = arith.constant 0 : i32
    return %c0_i32, %c0_i32_0 : i32, i32
  }
  func.func @transform_4(%arg0: i32) -> (i32, i32) {
    %c0_i32 = arith.constant 0 : i32
    %c0_i32_0 = arith.constant 0 : i32
    %c0_i32_1 = arith.constant 0 : i32
    return %c0_i32, %c0_i32_0 : i32, i32
  }
  func.func @transform_5(%arg0: i32) -> (i32, i32) {
    %c0_i32 = arith.constant 0 : i32
    %c0_i32_0 = arith.constant 0 : i32
    %c0_i32_1 = arith.constant 0 : i32
    return %c0_i32, %c0_i32_0 : i32, i32
  }
  func.func @transform_6(%arg0: i32) -> (i32, i32) {
    %c0_i32 = arith.constant 0 : i32
    %c0_i32_0 = arith.constant 0 : i32
    %c0_i32_1 = arith.constant 0 : i32
    return %c0_i32, %c0_i32_0 : i32, i32
  }
}

</mosaic_0001>

<bundles_post_ra>
// kernel: pwattn_forward.2
= control target key start
LH: loop header
LB: loop body
LE: loop exit
PB: predicated region body
PF: predicated region fallthrough
CT: control target
= control target key end

     0   :  { %v158_v0 = vmov 0.0|0.0   ;;  %vm159_vm0 = vmmov 0   ;;  %v160_v4 = vmov 0.0   ;;  %vm29_vm1 = vcmask 261120   ;;  %s162_s7 = smov 80   ;;  %s220_s1 = inlined_call_operand.vmem [shape: f32[32,80], index: 1, kind: input, shape index: {}]   ;;  %s221_s0 = inlined_call_operand.vmem [shape: f32[4,32], index: 0, kind: input, shape index: {}]   ;;  %s222_s2 = inlined_call_operand.vmem [shape: f32[1,80], index: 2, kind: input, shape index: {}]   ;;  %s223_s3 = inlined_call_operand.vmem [shape: f32[4,16], index: 3, kind: output, shape index: {0}]   ;;  %s224_s5 = inlined_call_operand.vmem [shape: f32[4,32], index: 5, kind: output, shape index: {2}]   ;;  %s225_s4 = inlined_call_operand.vmem [shape: f32[4,32], index: 4, kind: output, shape index: {1}]  }
   0x1   :  { %147 = vmatprep.subr.bf16.mxu0 %v158_v0  ;;  %v18_v1 = vld [vmem:[%s220_s1] sm:$0xff]  ;;  %v19_v2 = vld [vmem:[%s220_s1 + $0x8] sm:$0xff]  ;;  %v20_v3 = vld [vmem:[%s220_s1 + $0x10] sm:$0xff]  ;;  %144 = vmatprep.mubr.msk.f32.mxu0 %vm159_vm0, %v160_v4  ;;  %vm104_vm2 = vcmask 125952   ;;  %vm110_vm3 = vcmask 257024  }
   0x2   :  { %v148_v5 = vpack.c.bf16 %v19_v2, %v18_v1  ;;  %v21_v6 = vld [vmem:[%s220_s1 + $0x18] sm:$0xff]  ;;  %v17_v8 = vld [vmem:[%s221_s0] sm:$0xf]  ;;  %s161_s1 = smov 112  }
   0x3   :  { %v151_v7 = vpack.c.bf16 %v21_v6, %v20_v3  ;;  %v129_v9 = vld [vmem:[%s222_s2] ss:$0 sm:$0xff] }
   0x4   :  { %149 = vmatpush3.bf16.msra.mxu0 %v148_v5 }
   0x5   :  { %150 = vmatprep.subr.bf16.mxu0 %v158_v0 }
   0x8   :  { %152 = vmatpush3.bf16.msra.mxu0 %v151_v7 }
   0xb   :  { %145 = vmatmul.mubr.msk.f32.vlgmr.msra.gmra.mrb[0].mxu0 %vm29_vm1, %v17_v8 }
  0xde   :  { %v99_v10 = vpop.f32.mrb[0].mxu0 }
  0xdf   :  { %v100_v11 = vadd.f32 %v129_v9, %v99_v10  ;;  %v146_v12 = vpop.f32.mrb[1].mxu0 }
  0xe1   :  { %v103_v13 = vmax.f32 %v100_v11, 0.0 }
  0xe3   :  { %107 = vrot.lane.b32.xlu0 %v103_v13, %s161_s1  ;;  %105 = vst.msk [vmem:[%s223_s3] sm:$0xf] %vm104_vm2, %v103_v13 }
  0xe7   :  { %113 = vrot.lane.b32.xlu0 %v100_v11, %s162_s7 }
 0x155   :  { %v108_v14 = vpop.permute.xlu0 %107 }
 0x156   :  { %111 = vst.msk [vmem:[%s224_s5] sm:$0xf] %vm110_vm3, %v108_v14 }
 0x159   :  { %v114_v15 = vpop.permute.xlu0 %113 }
 0x15a   :  { %116 = vst.msk [vmem:[%s225_s4] sm:$0xf] %vm110_vm3, %v114_v15 }

// kernel: pwattn_forward.3
= control target key start
LH: loop header
LB: loop body
LE: loop exit
PB: predicated region body
PF: predicated region fallthrough
CT: control target
= control target key end

     0   :  { %vm32_vm0 = vcmask 64512   ;;  %v1023_v2 = vmov 0.0   ;;  %vm1024_vm1 = vmmov 0   ;;  %s1177_s0 = inlined_call_operand.vmem [shape: f32[4,2,8], index: 0, kind: input, shape index: {}]   ;;  %s1178_s1 = inlined_call_operand.vmem [shape: f32[4,4,8], index: 1, kind: input, shape index: {}]   ;;  %s1179_s2 = inlined_call_operand.vmem [shape: f32[4,4,8], index: 2, kind: input, shape index: {}]   ;;  %s1180_s3 = inlined_call_operand.vmem [shape: f32[4,16], index: 3, kind: input, shape index: {}]   ;;  %s1181_s4 = inlined_call_operand.vmem [shape: f32[16,16], index: 4, kind: input, shape index: {}]   ;;  %s1182_s5 = inlined_call_operand.vmem [shape: f32[1,16], index: 5, kind: input, shape index: {}]   ;;  %s1183_s6 = inlined_call_operand.hbm [shape: f32[4,16], index: 6, kind: output, shape index: {}]  }
   0x1   :  { %v28_v0 = vld [vmem:[%s1178_s1] sm:$0xf]  ;;  %v30_v1 = vld [vmem:[%s1178_s1 + $0x8] sm:$0xf]  ;;  %927 = vmatprep.subr.mxu1 %v1023_v2  ;;  %937 = vmatprep.subr.mxu0 %v1023_v2  ;;  %v26_v4 = vld [vmem:[%s1177_s0 + $0x4] sm:$0x3] }
   0x2   :  { %928 = vmatpush3.xpose.msk.msra.mxu1 %vm32_vm0, %v28_v0  ;;  %938 = vmatpush3.xpose.msk.msra.mxu0 %vm32_vm0, %v30_v1  ;;  %v24_v3 = vld [vmem:[%s1177_s0] sm:$0x3]  ;;  %v29_v5 = vld [vmem:[%s1178_s1 + $0x4] sm:$0xf] }
   0x3   :  { %929 = vmatprep.mubr.msk.f32.mxu1 %vm1024_vm1, %v1023_v2  ;;  %939 = vmatprep.mubr.msk.f32.mxu0 %vm1024_vm1, %v1023_v2 }
   0x4   :  { %11 = vsyncpa [#allocation3], 0  ;;  %932 = vmatprep.subr.mxu1 %v1023_v2  ;;  %947 = vmatprep.subr.mxu0 %v1023_v2  ;;  %v25_v6 = vld [vmem:[%s1177_s0 + $0x2] sm:$0x3]  ;;  %v31_v7 = vld [vmem:[%s1178_s1 + $0xc] sm:$0xf] }
   0x5   :  { %930 = vmatmul.mubr.msk.f32.vlgmr.msra.gmra.mrb[0].mxu1 %vm32_vm0, %v24_v3  ;;  %940 = vmatmul.mubr.msk.f32.vlgmr.msra.gmra.mrb[0].mxu0 %vm32_vm0, %v26_v4  ;;  %v27_v8 = vld [vmem:[%s1177_s0 + $0x6] sm:$0x3]  ;;  %vm341_vm2 = vcmask 25600   ;;  %v386_v45 = vld [vmem:[%s1179_s2] sm:$0xf]  ;;  %vm394_vm3 = vcmask 1043456  }
   0x6   :  { %933 = vmatpush3.xpose.msk.msra.mxu1 %vm32_vm0, %v29_v5  ;;  %934 = vmatprep.mubr.msk.f32.mxu1 %vm1024_vm1, %v1023_v2  ;;  %v387_v46 = vld [vmem:[%s1179_s2 + $0x4] sm:$0xf]  ;;  %vm390_vm4 = vcmask 31744   ;;  %v388_v53 = vld [vmem:[%s1179_s2 + $0x8] sm:$0xf]  ;;  %vm712_vm5 = vcmask 1041409  }
   0x7   :  { %942 = vmatprep.subr.mxu1 %v1023_v2  ;;  %949 = vmatprep.mubr.msk.f32.mxu0 %vm1024_vm1, %v1023_v2  ;;  %v389_v57 = vld [vmem:[%s1179_s2 + $0xc] sm:$0xf]  ;;  %v696_v61 = vld [vmem:[%s1181_s4] sm:$0xff]  ;;  %vm715_vm6 = vcmask 1042434   ;;  %vm718_vm7 = vcmask 1043459   ;;  %vm872_vm8 = vcmask 125952  }
   0x8   :  { %948 = vmatpush3.msk.msra.mxu0 %vm394_vm3, %v386_v45 }
   0x9   :  { %935 = vmatmul.mubr.msk.f32.vlgmr.msra.gmra.mrb[2].mxu1 %vm32_vm0, %v25_v6  ;;  %957 = vmatprep.subr.mxu0 %v1023_v2 }
   0xa   :  { %943 = vmatpush3.xpose.msk.msra.mxu1 %vm32_vm0, %v31_v7  ;;  %944 = vmatprep.mubr.msk.f32.mxu1 %vm1024_vm1, %v1023_v2 }
   0xb   :  { %952 = vmatprep.subr.mxu1 %v1023_v2 }
   0xd   :  { %945 = vmatmul.mubr.msk.f32.vlgmr.msra.gmra.mrb[4].mxu1 %vm32_vm0, %v27_v8 }
   0xe   :  { %954 = vmatprep.mubr.msk.f32.mxu1 %vm1024_vm1, %v1023_v2  ;;  %953 = vmatpush3.msk.msra.mxu1 %vm394_vm3, %v387_v46 }
   0xf   :  { %962 = vmatprep.subr.mxu1 %v1023_v2 }
  0xd8   :  { %v105_v9 = vpop.f32.mrb[0].mxu1  ;;  %v257_v10 = vpop.f32.mrb[0].mxu0 }
  0xd9   :  { %v337_v11 = vmul.f32 0.35355338, %v105_v9  ;;  %v339_v12 = vmul.f32 0.35355338, %v257_v10  ;;  %v931_v13 = vpop.f32.mrb[1].mxu1  ;;  %v941_v14 = vpop.f32.mrb[1].mxu0 }
  0xdb   :  { %v348_v15 = vsel %vm341_vm2, %v339_v12, -inf  ;;  %v342_v16 = vsel %vm341_vm2, %v337_v11, -inf }
  0xdc   :  { %349 = vmax.xlane.f32.xlu1 %v348_v15  ;;  %343 = vmax.xlane.f32.xlu0 %v342_v16  ;;  %v181_v17 = vpop.f32.mrb[2].mxu1 }
  0xdd   :  { %v338_v18 = vmul.f32 0.35355338, %v181_v17  ;;  %v936_v19 = vpop.f32.mrb[3].mxu1  ;;  %v697_v17 = vld [vmem:[%s1181_s4 + $0x8] sm:$0xff]  ;;  %s1025_s4 = smov [#allocation2]  }
  0xde   :  { %s880_s26 = sshll.u32 %s1025_s4, 4  ;;  %s881_s26 = int_to_ptr.vmem [resolvable:$true] %s880_s26 }
  0xdf   :  { %v345_v20 = vsel %vm341_vm2, %v338_v18, -inf  ;;  %s999_s27 = scalar_lea.vmem %s881_s26, 64  ;;  %p1004_p1 = scmp.lt.s32.totalorder %s881_s26, %s881_s26 }
  0xe0   :  { %346 = vmax.xlane.f32.xlu0 %v345_v20  ;;  %v333_v21 = vpop.f32.mrb[4].mxu1  ;;  %v698_v20 = vld [vmem:[%s1180_s3] sm:$0xf]  ;;  %p1000_p0 = scmp.ne.s32.totalorder %s881_s26, %s999_s27  ;;  %p1005_p2 = scmp.lt.s32.totalorder %s999_s27, %s999_s27 }
  0xe1   :  { %v340_v22 = vmul.f32 0.35355338, %v333_v21  ;;  %v946_v23 = vpop.f32.mrb[5].mxu1  ;;  %v904_v21 = vld [vmem:[%s1182_s5] ss:$0 sm:$0xff] }
  0xe2   :  { %p1006_p3 = por %p1005_p2, %p1004_p1 }
  0xe3   :  { %v351_v24 = vsel %vm341_vm2, %v340_v22, -inf }
  0xe4   :  { %352 = vmax.xlane.f32.xlu1 %v351_v24  ;;  %p1007_p4 = pnand %p1006_p3, %p1000_p0 }
 0x169   :  { %v350_v25 = vpop.xlane.xlu1 %349  ;;  %v344_v26 = vpop.xlane.xlu0 %343 }
 0x16a   :  { %v356_v27 = vsub.f32 %v339_v12, %v350_v25  ;;  %v354_v28 = vsub.f32 %v337_v11, %v344_v26 }
 0x16c   :  { %v358_v29 = vmul.f32 1.442695, %v354_v28  ;;  %v362_v30 = vmul.f32 1.442695, %v356_v27 }
 0x16d   :  { %v347_v31 = vpop.xlane.xlu0 %346 }
 0x16e   :  { %v355_v32 = vsub.f32 %v338_v18, %v347_v31  ;;  %983 = vpow2.f32 %v358_v29 }
 0x16f   :  { %985 = vpow2.f32 %v362_v30 }
 0x170   :  { %v360_v33 = vmul.f32 1.442695, %v355_v32 }
 0x171   :  { %v353_v34 = vpop.xlane.xlu1 %352 }
 0x172   :  { %987 = vpow2.f32 %v360_v33  ;;  %v357_v35 = vsub.f32 %v340_v22, %v353_v34  ;;  %v706_v22 = vadd.f32 %v904_v21, %v698_v20 }
 0x174   :  { %v364_v36 = vmul.f32 1.442695, %v357_v35 }
 0x176   :  { %989 = vpow2.f32 %v364_v36 }
 0x178   :  { %v984_v37 = vpop.eup %983 }
 0x179   :  { %v366_v38 = vsel %vm341_vm2, %v984_v37, 0.0  ;;  %v986_v39 = vpop.eup %985 }
 0x17a   :  { %367 = vadd.xlane.f32.xlu0 %v366_v38  ;;  %v372_v42 = vsel %vm341_vm2, %v986_v39, 0.0 }
 0x17c   :  { %v988_v40 = vpop.eup %987 }
 0x17d   :  { %v369_v41 = vsel %vm341_vm2, %v988_v40, 0.0 }
 0x17e   :  { %370 = vadd.xlane.f32.xlu1 %v369_v41  ;;  %373 = vadd.xlane.f32.xlu0 %v372_v42 }
 0x180   :  { %v990_v43 = vpop.eup %989 }
 0x181   :  { %v375_v44 = vsel %vm341_vm2, %v990_v43, 0.0 }
 0x182   :  { %376 = vadd.xlane.f32.xlu1 %v375_v44 }
 0x207   :  { %v368_v47 = vpop.xlane.xlu0 %367 }
 0x208   :  { %991 = vrcp.f32 %v368_v47 }
 0x20b   :  { %v371_v48 = vpop.xlane.xlu1 %370  ;;  %v374_v49 = vpop.xlane.xlu0 %373 }
 0x20c   :  { %993 = vrcp.f32 %v371_v48 }
 0x20d   :  { %995 = vrcp.f32 %v374_v49 }
 0x20f   :  { %v377_v50 = vpop.xlane.xlu1 %376 }
 0x210   :  { %997 = vrcp.f32 %v377_v50 }
 0x212   :  { %v992_v51 = vpop.eup %991 }
 0x213   :  { %v382_v52 = vmul.f32 %v992_v51, %v984_v37 }
 0x215   :  { %950 = vmatmul.mubr.msk.f32.vlgmr.msra.gmra.mrb[2].mxu0 %vm390_vm4, %v382_v52 }
 0x216   :  { %v994_v54 = vpop.eup %993  ;;  %958 = vmatpush3.msk.msra.mxu0 %vm394_vm3, %v388_v53  ;;  %959 = vmatprep.mubr.msk.f32.mxu0 %vm1024_vm1, %v1023_v2 }
 0x217   :  { %v996_v55 = vpop.eup %995  ;;  %v383_v56 = vmul.f32 %v994_v54, %v988_v40  ;;  %967 = vmatprep.subr.mxu0 %v1023_v2 }
 0x218   :  { %v384_v58 = vmul.f32 %v996_v55, %v986_v39 }
 0x219   :  { %955 = vmatmul.mubr.msk.f32.vlgmr.msra.gmra.mrb[6].mxu1 %vm390_vm4, %v383_v56 }
 0x21a   :  { %v998_v59 = vpop.eup %997  ;;  %960 = vmatmul.mubr.msk.f32.vlgmr.msra.gmra.mrb[4].mxu0 %vm390_vm4, %v384_v58  ;;  %963 = vmatpush3.msk.msra.mxu1 %vm394_vm3, %v389_v57 }
 0x21b   :  { %v385_v60 = vmul.f32 %v998_v59, %v990_v43  ;;  %964 = vmatprep.mubr.msk.f32.mxu1 %vm1024_vm1, %v1023_v2  ;;  %969 = vmatprep.mubr.msk.f32.mxu0 %vm1024_vm1, %v1023_v2 }
 0x21c   :  { %968 = vmatpush3.msra.mxu0 %v696_v61 }
 0x21d   :  { %965 = vmatmul.mubr.msk.f32.vlgmr.msra.gmra.mrb[8].mxu1 %vm390_vm4, %v385_v60  ;;  %972 = vmatprep.subr.mxu0 %v1023_v2 }
 0x2e8   :  { %v464_v62 = vpop.f32.mrb[2].mxu0 }
 0x2e9   :  { %v951_v63 = vpop.f32.mrb[3].mxu0  ;;  %v793_v0 = vrot.slane %v464_v62, 1 }
 0x2ec   :  { %v540_v1 = vpop.f32.mrb[6].mxu1 }
 0x2ed   :  { %v711_v3 = vrot.slane %v540_v1, 7  ;;  %v794_v4 = vsel %vm712_vm5, %v540_v1, %v793_v0  ;;  %v616_v5 = vpop.f32.mrb[4].mxu0  ;;  %v956_v6 = vpop.f32.mrb[7].mxu1 }
 0x2ee   :  { %v714_v7 = vrot.slane %v616_v5, 6  ;;  %v795_v8 = vrot.slane %v616_v5, 7  ;;  %v961_v9 = vpop.f32.mrb[5].mxu0 }
 0x2ef   :  { %v713_v10 = vsel %vm712_vm5, %v711_v3, %v464_v62 }
 0x2f0   :  { %v716_v11 = vsel %vm715_vm6, %v714_v7, %v713_v10  ;;  %v796_v12 = vsel %vm715_vm6, %v795_v8, %v794_v4  ;;  %v692_v13 = vpop.f32.mrb[8].mxu1 }
 0x2f1   :  { %v717_v14 = vrot.slane %v692_v13, 5  ;;  %v797_v15 = vrot.slane %v692_v13, 6  ;;  %v966_v16 = vpop.f32.mrb[9].mxu1 }
 0x2f3   :  { %v719_v18 = vsel %vm718_vm7, %v717_v14, %v716_v11  ;;  %v798_v19 = vsel %vm718_vm7, %v797_v15, %v796_v12 }
 0x2f4   :  { %970 = vmatmul.mubr.msk.f32.vlgmr.msra.gmra.mrb[6].mxu0 %vm32_vm0, %v719_v18 }
 0x2f5   :  { %973 = vmatpush3.msra.mxu0 %v697_v17  ;;  %974 = vmatprep.mubr.msk.f32.mxu0 %vm1024_vm1, %v1023_v2 }
 0x2fc   :  { %975 = vmatmul.mubr.msk.f32.vlgmr.msra.gmra.mrb[6].mxu0 %vm32_vm0, %v798_v19 }
 0x3cf   :  { %v867_v23 = vpop.f32.mrb[6].mxu0 }
 0x3d0   :  { %v977_v24 = vadd.f32 %v867_v23, %v706_v22  ;;  %v976_v25 = vpop.f32.mrb[7].mxu0 }
 0x3d2   :  { %873 = vst.msk [vmem:[#allocation2] sm:$0xf] %vm872_vm8, %v977_v24 }
 0x3d3   :  { %1010 = shalt.err (!%p1007_p4)
}
 0x3d4   :  { %s1011_s5 = scalar_lea.hbm %s1183_s6, 64 }
 0x3d5   :  { %p1012_p5 = scmp.ne.s32.totalorder %s1183_s6, %s1011_s5  ;;  %p1015_p6 = scmp.lt.u32.totalorder %s1011_s5, %s1183_s6 }
 0x3d7   :  { %p1017_p7 = pnand %p1015_p6, %p1012_p5 }
 0x3d9   :  { %1020 = shalt.err (!%p1017_p7)
}
 0x3da   :  { %883 = dma.vmem_to_hbm [thread:$0]  %s881_s26, 64, %s1183_s6, [#allocation3]  }
 0x3db   :  { %1021 = dma.done.wait [#allocation3], 64  }
 0x3dc   :  { %1022 = vsyncadd [#allocation3], 4294967232 }
 0x3dd   :  { %887 = vsyncpa [#allocation3], 1 }

</bundles_post_ra>
